<compile_context>
chip_gen: v5e
topology: v5e:2x2
jax: 0.10.0
libtpu: 0.0.40
codegen_flags: <defaults>
</compile_context>

<pallas_src>
import jax
import jax.numpy as jnp
from jax.experimental import pallas as pl
from jax.experimental.pallas import tpu as pltpu


def _round_up(x, m):
    return ((x + m - 1) // m) * m


def make_gru_kernel(B, H, GP, Vp, compute_dtype):
    """Build the kernel body (single grid point, all operands resident in VMEM)."""

    def kernel(tok_ref, emb_ref, h_ref, w_i_ref, w_h_ref, b_gi_ref, b_hn_ref,
               w_lin_ref, b_lin_ref, out_ref, hout_ref):
        # ---- fused embedding gather: one-hot(tokens) @ emb_table on the MXU.
        tok = tok_ref[...]                                        # (B, 1) int32
        vocab_ids = jax.lax.broadcasted_iota(jnp.int32, (B, Vp), 1)
        onehot = jnp.where(vocab_ids == tok, 1.0, 0.0).astype(compute_dtype)
        e = jnp.dot(onehot, emb_ref[...],
                    preferred_element_type=jnp.float32)           # (B, E), E == H

        # ---- hidden-path matmuls for ALL three cells, hoisted off the serial
        # chain (they depend only on the incoming h, not on h0/h1/h2).
        h_all = h_ref[...]                                        # (3B, H) f32
        gh_all = jnp.dot(h_all.astype(compute_dtype), w_h_ref[...],
                         preferred_element_type=jnp.float32)      # (3B, GP)

        b_gi = b_gi_ref[...]                                      # (1, GP) folded biases
        b_hn = b_hn_ref[...]                                      # (1, H)  n-gate hidden bias

        x = e
        for c in range(3):                                        # unrolled shared cells
            # One gate-packed input-path dot per cell (gate order r, z, n).
            gi = jnp.dot(x.astype(compute_dtype), w_i_ref[...],
                         preferred_element_type=jnp.float32) + b_gi   # (B, GP)
            gh = gh_all[c * B:(c + 1) * B, :]
            r = jax.nn.sigmoid(gi[:, 0:H] + gh[:, 0:H])
            z = jax.nn.sigmoid(gi[:, H:2 * H] + gh[:, H:2 * H])
            n = jnp.tanh(gi[:, 2 * H:3 * H] + r * (gh[:, 2 * H:3 * H] + b_hn))
            h_prev = h_all[c * B:(c + 1) * B, :]
            x = (1.0 - z) * n + z * h_prev                        # h' (f32), PyTorch GRUCell
            hout_ref[c * B:(c + 1) * B, :] = x

        # ---- final linear; Vp is a multiple of 128 -> unmasked lane-dense store.
        out_ref[...] = (jnp.dot(x.astype(compute_dtype), w_lin_ref[...],
                                preferred_element_type=jnp.float32)
                        + b_lin_ref[...])

    return kernel


def prep_params(raw_params, compute_dtype=jnp.float32):
    """Host-side weight repacking: gate packing, bias folding, lane padding, dtype cast."""
    emb, w_i, w_h, b_i, b_h, w_lin, b_lin = raw_params
    V, E = emb.shape
    H = w_h.shape[-1]
    GP = _round_up(3 * H, 128)           # packed-gate lane width (zero padded)
    Vp = _round_up(V, 128)               # lane-dense vocab width (zero padded)

    # Embedding table, rows selected in-kernel by the one-hot matmul.
    emb_p = jnp.zeros((Vp, E), compute_dtype).at[:V].set(emb.astype(compute_dtype))

    # Gate-packed weights, pre-transposed to (in, out), gate order (r, z, n).
    w_i_p = jnp.zeros((E, GP), compute_dtype).at[:, :3 * H].set(
        jnp.concatenate([w_i[0], w_i[1], w_i[2]], axis=1).astype(compute_dtype))
    w_h_p = jnp.zeros((H, GP), compute_dtype).at[:, :3 * H].set(
        jnp.concatenate([w_h[0], w_h[1], w_h[2]], axis=1).astype(compute_dtype))

    # Fold b_h[r], b_h[z] into the input-path bias; keep b_h[n] separate
    # (it must be added inside r * (...) per PyTorch GRUCell semantics).
    b_gi = jnp.zeros((1, GP), jnp.float32)
    b_gi = b_gi.at[:, 0:H].set(b_i[0] + b_h[0])
    b_gi = b_gi.at[:, H:2 * H].set(b_i[1] + b_h[1])
    b_gi = b_gi.at[:, 2 * H:3 * H].set(b_i[2])
    b_hn = b_h[2].astype(jnp.float32)                       # (1, H)

    # Final linear, padded to lane-dense vocab.
    w_lin_p = jnp.zeros((H, Vp), compute_dtype).at[:, :V].set(w_lin.astype(compute_dtype))
    b_lin_p = jnp.zeros((1, Vp), jnp.float32).at[:, :V].set(b_lin)

    return dict(emb=emb_p, w_i=w_i_p, w_h=w_h_p, b_gi=b_gi, b_hn=b_hn,
                w_lin=w_lin_p, b_lin=b_lin_p,
                V=V, E=E, H=H, GP=GP, Vp=Vp, dtype=compute_dtype)


def gru_forward(tokens, h, p):
    """tokens: (B,) int ids, h: (3, B, H). Returns (logits (B,V), h_out (3,B,H))."""
    B = tokens.shape[0]
    H, E, GP, Vp, V = p["H"], p["E"], p["GP"], p["Vp"], p["V"]
    assert E == H, "forward chains seq_1 output back into seq_1, so E must equal H"
    assert h.shape == (3, B, H)

    tok2d = tokens.astype(jnp.int32).reshape(B, 1)
    h2d = h.astype(jnp.float32).reshape(3 * B, H)

    kernel = make_gru_kernel(B, H, GP, Vp, p["dtype"])
    vmem = pl.BlockSpec(memory_space=pltpu.MemorySpace.VMEM)
    logits_p, hout2d = pl.pallas_call(
        kernel,
        out_shape=(jax.ShapeDtypeStruct((B, Vp), jnp.float32),
                   jax.ShapeDtypeStruct((3 * B, H), jnp.float32)),
        in_specs=[vmem] * 9,
        out_specs=(vmem, vmem),
    )(tok2d, p["emb"], h2d, p["w_i"], p["w_h"], p["b_gi"], p["b_hn"],
      p["w_lin"], p["b_lin"])
    return logits_p[:, :V], hout2d.reshape(3, B, H)


def gru_reference(tokens, h, raw_params):
    """Pure-JAX reference with identical PyTorch-GRUCell semantics."""
    emb, w_i, w_h, b_i, b_h, w_lin, b_lin = raw_params
    x = emb[tokens]

    def cell(x, hh):
        r = jax.nn.sigmoid(x @ w_i[0] + b_i[0] + hh @ w_h[0] + b_h[0])
        z = jax.nn.sigmoid(x @ w_i[1] + b_i[1] + hh @ w_h[1] + b_h[1])
        n = jnp.tanh(x @ w_i[2] + b_i[2] + r * (hh @ w_h[2] + b_h[2]))
        return (1.0 - z) * n + z * hh

    h0 = cell(x, h[0])
    h1 = cell(h0, h[1])
    h2 = cell(h1, h[2])
    return h2 @ w_lin + b_lin, jnp.stack([h0, h1, h2])


if __name__ == "__main__":
    # Small shapes consistent with the module; the forward feeds seq_1 its own
    # output, so embedding_size must equal hidden_size.
    VOCAB, EMB, HID, BATCH = 64, 32, 32, 8

    key = jax.random.PRNGKey(0)
    ks = jax.random.split(key, 9)
    scale = 1.0 / jnp.sqrt(jnp.float32(HID))

    emb_table = jax.random.normal(ks[0], (VOCAB, EMB), jnp.float32)
    w_i = jax.random.uniform(ks[1], (3, EMB, HID), jnp.float32, -scale, scale)
    w_h = jax.random.uniform(ks[2], (3, HID, HID), jnp.float32, -scale, scale)
    b_i = jax.random.uniform(ks[3], (3, 1, HID), jnp.float32, -scale, scale)
    b_h = jax.random.uniform(ks[4], (3, 1, HID), jnp.float32, -scale, scale)
    w_lin = jax.random.uniform(ks[5], (HID, VOCAB), jnp.float32, -scale, scale)
    b_lin = jax.random.uniform(ks[6], (1, VOCAB), jnp.float32, -scale, scale)
    raw = (emb_table, w_i, w_h, b_i, b_h, w_lin, b_lin)

    tokens = jax.random.randint(ks[7], (BATCH,), 0, VOCAB)       # x: (B,) token ids
    h0 = jax.random.normal(ks[8], (3, BATCH, HID), jnp.float32)  # h: (3, B, H)

    ref_out, ref_h = gru_reference(tokens, h0, raw)

    # f32 MXU path: tight-tolerance semantic check.
    p32 = prep_params(raw, jnp.float32)
    out, h_out = jax.block_until_ready(gru_forward(tokens, h0, p32))
    assert out.shape == (BATCH, VOCAB) and h_out.shape == (3, BATCH, HID)
    assert jnp.allclose(out, ref_out, rtol=1e-4, atol=1e-4)
    assert jnp.allclose(h_out, ref_h, rtol=1e-4, atol=1e-4)

    # bf16 MXU operands (v6e/v7x recommendation), f32 accumulation:
    # compare against the f32 reference with a tolerance matching bf16 rounding.
    pbf = prep_params(raw, jnp.bfloat16)
    out_b, h_b = jax.block_until_ready(gru_forward(tokens, h0, pbf))
    assert jnp.allclose(out_b, ref_out, rtol=5e-2, atol=5e-2)
    assert jnp.allclose(h_b, ref_h, rtol=5e-2, atol=5e-2)

    print("KERNEL_OK")
</pallas_src>

<mosaic_0001>
module attributes {stable_mosaic.version = 11 : i64} {
  func.func @kernel(%arg0: memref<8x1xi32, #tpu.memory_space<vmem>>, %arg1: memref<128x32xf32, #tpu.memory_space<vmem>>, %arg2: memref<24x32xf32, #tpu.memory_space<vmem>>, %arg3: memref<32x128xf32, #tpu.memory_space<vmem>>, %arg4: memref<32x128xf32, #tpu.memory_space<vmem>>, %arg5: memref<1x128xf32, #tpu.memory_space<vmem>>, %arg6: memref<1x32xf32, #tpu.memory_space<vmem>>, %arg7: memref<32x128xf32, #tpu.memory_space<vmem>>, %arg8: memref<1x128xf32, #tpu.memory_space<vmem>>, %arg9: memref<8x128xf32, #tpu.memory_space<vmem>>, %arg10: memref<24x32xf32, #tpu.memory_space<vmem>>) attributes {dimension_semantics = [], scalar_prefetch = 0 : i64, scratch_operands = 0 : i64, tpu.core_type = #tpu.core_type<tc>} {
    %c0 = arith.constant 0 : index
    %c0_0 = arith.constant 0 : index
    %0 = vector.load %arg0[%c0, %c0_0] : memref<8x1xi32, #tpu.memory_space<vmem>>, vector<8x1xi32>
    %1 = tpu.iota {dimensions = array<i32: 1>} : vector<8x128xi32>
    %2 = vector.broadcast %0 : vector<8x1xi32> to vector<8x128xi32>
    %3 = arith.cmpi eq, %1, %2 : vector<8x128xi32>
    %cst = arith.constant 1.000000e+00 : f32
    %cst_1 = arith.constant 0.000000e+00 : f32
    %4 = vector.broadcast %cst : f32 to vector<8x128xf32>
    %5 = vector.broadcast %cst_1 : f32 to vector<8x128xf32>
    %6 = arith.select %3, %4, %5 : vector<8x128xi1>, vector<8x128xf32>
    %c0_2 = arith.constant 0 : index
    %c0_3 = arith.constant 0 : index
    %7 = vector.load %arg1[%c0_2, %c0_3] : memref<128x32xf32, #tpu.memory_space<vmem>>, vector<128x32xf32>
    %cst_4 = arith.constant dense<0.000000e+00> : vector<8x32xf32>
    %8 = tpu.matmul %6, %7, %cst_4 {dimension_numbers = #tpu.dot_dimension_numbers<[1], [0], [0], [1], [0, 0, 1, 1], [], []>} : vector<8x128xf32>, vector<128x32xf32>, vector<8x32xf32> -> vector<8x32xf32>
    %c0_5 = arith.constant 0 : index
    %c0_6 = arith.constant 0 : index
    %9 = vector.load %arg2[%c0_5, %c0_6] : memref<24x32xf32, #tpu.memory_space<vmem>>, vector<24x32xf32>
    %c0_7 = arith.constant 0 : index
    %c0_8 = arith.constant 0 : index
    %10 = vector.load %arg4[%c0_7, %c0_8] : memref<32x128xf32, #tpu.memory_space<vmem>>, vector<32x128xf32>
    %cst_9 = arith.constant dense<0.000000e+00> : vector<24x128xf32>
    %11 = tpu.matmul %9, %10, %cst_9 {dimension_numbers = #tpu.dot_dimension_numbers<[1], [0], [0], [1], [0, 0, 1, 1], [], []>} : vector<24x32xf32>, vector<32x128xf32>, vector<24x128xf32> -> vector<24x128xf32>
    %c0_10 = arith.constant 0 : index
    %c0_11 = arith.constant 0 : index
    %12 = vector.load %arg5[%c0_10, %c0_11] : memref<1x128xf32, #tpu.memory_space<vmem>>, vector<1x128xf32>
    %c0_12 = arith.constant 0 : index
    %c0_13 = arith.constant 0 : index
    %13 = vector.load %arg6[%c0_12, %c0_13] : memref<1x32xf32, #tpu.memory_space<vmem>>, vector<1x32xf32>
    %c0_14 = arith.constant 0 : index
    %c0_15 = arith.constant 0 : index
    %14 = vector.load %arg3[%c0_14, %c0_15] : memref<32x128xf32, #tpu.memory_space<vmem>>, vector<32x128xf32>
    %cst_16 = arith.constant dense<0.000000e+00> : vector<8x128xf32>
    %15 = tpu.matmul %8, %14, %cst_16 {dimension_numbers = #tpu.dot_dimension_numbers<[1], [0], [0], [1], [0, 0, 1, 1], [], []>} : vector<8x32xf32>, vector<32x128xf32>, vector<8x128xf32> -> vector<8x128xf32>
    %16 = vector.broadcast %12 : vector<1x128xf32> to vector<8x128xf32>
    %17 = arith.addf %15, %16 : vector<8x128xf32>
    %18 = vector.extract_strided_slice %11 {offsets = [0, 0], sizes = [8, 128], strides = [1, 1]} : vector<24x128xf32> to vector<8x128xf32>
    %19 = vector.extract_strided_slice %17 {offsets = [0, 0], sizes = [8, 32], strides = [1, 1]} : vector<8x128xf32> to vector<8x32xf32>
    %20 = vector.extract_strided_slice %18 {offsets = [0, 0], sizes = [8, 32], strides = [1, 1]} : vector<8x128xf32> to vector<8x32xf32>
    %21 = arith.addf %19, %20 : vector<8x32xf32>
    %22 = arith.negf %21 : vector<8x32xf32>
    %23 = math.exp %22 : vector<8x32xf32>
    %cst_17 = arith.constant 1.000000e+00 : f32
    %24 = vector.broadcast %cst_17 : f32 to vector<8x32xf32>
    %25 = arith.addf %24, %23 : vector<8x32xf32>
    %26 = arith.divf %24, %25 : vector<8x32xf32>
    %27 = vector.extract_strided_slice %17 {offsets = [0, 32], sizes = [8, 32], strides = [1, 1]} : vector<8x128xf32> to vector<8x32xf32>
    %28 = vector.extract_strided_slice %18 {offsets = [0, 32], sizes = [8, 32], strides = [1, 1]} : vector<8x128xf32> to vector<8x32xf32>
    %29 = arith.addf %27, %28 : vector<8x32xf32>
    %30 = arith.negf %29 : vector<8x32xf32>
    %31 = math.exp %30 : vector<8x32xf32>
    %cst_18 = arith.constant 1.000000e+00 : f32
    %32 = vector.broadcast %cst_18 : f32 to vector<8x32xf32>
    %33 = arith.addf %32, %31 : vector<8x32xf32>
    %34 = arith.divf %32, %33 : vector<8x32xf32>
    %35 = vector.extract_strided_slice %17 {offsets = [0, 64], sizes = [8, 32], strides = [1, 1]} : vector<8x128xf32> to vector<8x32xf32>
    %36 = vector.extract_strided_slice %18 {offsets = [0, 64], sizes = [8, 32], strides = [1, 1]} : vector<8x128xf32> to vector<8x32xf32>
    %37 = vector.broadcast %13 : vector<1x32xf32> to vector<8x32xf32>
    %38 = arith.addf %36, %37 : vector<8x32xf32>
    %39 = arith.mulf %26, %38 : vector<8x32xf32>
    %40 = arith.addf %35, %39 : vector<8x32xf32>
    %41 = math.tanh %40 : vector<8x32xf32>
    %42 = vector.extract_strided_slice %9 {offsets = [0, 0], sizes = [8, 32], strides = [1, 1]} : vector<24x32xf32> to vector<8x32xf32>
    %cst_19 = arith.constant 1.000000e+00 : f32
    %43 = vector.broadcast %cst_19 : f32 to vector<8x32xf32>
    %44 = arith.subf %43, %34 : vector<8x32xf32>
    %45 = arith.mulf %44, %41 : vector<8x32xf32>
    %46 = arith.mulf %34, %42 : vector<8x32xf32>
    %47 = arith.addf %45, %46 : vector<8x32xf32>
    %c0_20 = arith.constant 0 : index
    %c0_21 = arith.constant 0 : index
    %48 = vector.load %arg10[%c0_20, %c0_21] : memref<24x32xf32, #tpu.memory_space<vmem>>, vector<8x32xf32>
    tpu.vector_store %arg10[%c0_20, %c0_21], %47 {strides = array<i32>} : memref<24x32xf32, #tpu.memory_space<vmem>>, vector<8x32xf32>,
    %c0_22 = arith.constant 0 : index
    %c0_23 = arith.constant 0 : index
    %49 = vector.load %arg3[%c0_22, %c0_23] : memref<32x128xf32, #tpu.memory_space<vmem>>, vector<32x128xf32>
    %cst_24 = arith.constant dense<0.000000e+00> : vector<8x128xf32>
    %50 = tpu.matmul %47, %49, %cst_24 {dimension_numbers = #tpu.dot_dimension_numbers<[1], [0], [0], [1], [0, 0, 1, 1], [], []>} : vector<8x32xf32>, vector<32x128xf32>, vector<8x128xf32> -> vector<8x128xf32>
    %51 = vector.broadcast %12 : vector<1x128xf32> to vector<8x128xf32>
    %52 = arith.addf %50, %51 : vector<8x128xf32>
    %53 = vector.extract_strided_slice %11 {offsets = [8, 0], sizes = [8, 128], strides = [1, 1]} : vector<24x128xf32> to vector<8x128xf32>
    %54 = vector.extract_strided_slice %52 {offsets = [0, 0], sizes = [8, 32], strides = [1, 1]} : vector<8x128xf32> to vector<8x32xf32>
    %55 = vector.extract_strided_slice %53 {offsets = [0, 0], sizes = [8, 32], strides = [1, 1]} : vector<8x128xf32> to vector<8x32xf32>
    %56 = arith.addf %54, %55 : vector<8x32xf32>
    %57 = arith.negf %56 : vector<8x32xf32>
    %58 = math.exp %57 : vector<8x32xf32>
    %cst_25 = arith.constant 1.000000e+00 : f32
    %59 = vector.broadcast %cst_25 : f32 to vector<8x32xf32>
    %60 = arith.addf %59, %58 : vector<8x32xf32>
    %61 = arith.divf %59, %60 : vector<8x32xf32>
    %62 = vector.extract_strided_slice %52 {offsets = [0, 32], sizes = [8, 32], strides = [1, 1]} : vector<8x128xf32> to vector<8x32xf32>
    %63 = vector.extract_strided_slice %53 {offsets = [0, 32], sizes = [8, 32], strides = [1, 1]} : vector<8x128xf32> to vector<8x32xf32>
    %64 = arith.addf %62, %63 : vector<8x32xf32>
    %65 = arith.negf %64 : vector<8x32xf32>
    %66 = math.exp %65 : vector<8x32xf32>
    %cst_26 = arith.constant 1.000000e+00 : f32
    %67 = vector.broadcast %cst_26 : f32 to vector<8x32xf32>
    %68 = arith.addf %67, %66 : vector<8x32xf32>
    %69 = arith.divf %67, %68 : vector<8x32xf32>
    %70 = vector.extract_strided_slice %52 {offsets = [0, 64], sizes = [8, 32], strides = [1, 1]} : vector<8x128xf32> to vector<8x32xf32>
    %71 = vector.extract_strided_slice %53 {offsets = [0, 64], sizes = [8, 32], strides = [1, 1]} : vector<8x128xf32> to vector<8x32xf32>
    %72 = vector.broadcast %13 : vector<1x32xf32> to vector<8x32xf32>
    %73 = arith.addf %71, %72 : vector<8x32xf32>
    %74 = arith.mulf %61, %73 : vector<8x32xf32>
    %75 = arith.addf %70, %74 : vector<8x32xf32>
    %76 = math.tanh %75 : vector<8x32xf32>
    %77 = vector.extract_strided_slice %9 {offsets = [8, 0], sizes = [8, 32], strides = [1, 1]} : vector<24x32xf32> to vector<8x32xf32>
    %cst_27 = arith.constant 1.000000e+00 : f32
    %78 = vector.broadcast %cst_27 : f32 to vector<8x32xf32>
    %79 = arith.subf %78, %69 : vector<8x32xf32>
    %80 = arith.mulf %79, %76 : vector<8x32xf32>
    %81 = arith.mulf %69, %77 : vector<8x32xf32>
    %82 = arith.addf %80, %81 : vector<8x32xf32>
    %c8 = arith.constant 8 : index
    %c0_28 = arith.constant 0 : index
    %83 = vector.load %arg10[%c8, %c0_28] : memref<24x32xf32, #tpu.memory_space<vmem>>, vector<8x32xf32>
    tpu.vector_store %arg10[%c8, %c0_28], %82 {strides = array<i32>} : memref<24x32xf32, #tpu.memory_space<vmem>>, vector<8x32xf32>,
    %c0_29 = arith.constant 0 : index
    %c0_30 = arith.constant 0 : index
    %84 = vector.load %arg3[%c0_29, %c0_30] : memref<32x128xf32, #tpu.memory_space<vmem>>, vector<32x128xf32>
    %cst_31 = arith.constant dense<0.000000e+00> : vector<8x128xf32>
    %85 = tpu.matmul %82, %84, %cst_31 {dimension_numbers = #tpu.dot_dimension_numbers<[1], [0], [0], [1], [0, 0, 1, 1], [], []>} : vector<8x32xf32>, vector<32x128xf32>, vector<8x128xf32> -> vector<8x128xf32>
    %86 = vector.broadcast %12 : vector<1x128xf32> to vector<8x128xf32>
    %87 = arith.addf %85, %86 : vector<8x128xf32>
    %88 = vector.extract_strided_slice %11 {offsets = [16, 0], sizes = [8, 128], strides = [1, 1]} : vector<24x128xf32> to vector<8x128xf32>
    %89 = vector.extract_strided_slice %87 {offsets = [0, 0], sizes = [8, 32], strides = [1, 1]} : vector<8x128xf32> to vector<8x32xf32>
    %90 = vector.extract_strided_slice %88 {offsets = [0, 0], sizes = [8, 32], strides = [1, 1]} : vector<8x128xf32> to vector<8x32xf32>
    %91 = arith.addf %89, %90 : vector<8x32xf32>
    %92 = arith.negf %91 : vector<8x32xf32>
    %93 = math.exp %92 : vector<8x32xf32>
    %cst_32 = arith.constant 1.000000e+00 : f32
    %94 = vector.broadcast %cst_32 : f32 to vector<8x32xf32>
    %95 = arith.addf %94, %93 : vector<8x32xf32>
    %96 = arith.divf %94, %95 : vector<8x32xf32>
    %97 = vector.extract_strided_slice %87 {offsets = [0, 32], sizes = [8, 32], strides = [1, 1]} : vector<8x128xf32> to vector<8x32xf32>
    %98 = vector.extract_strided_slice %88 {offsets = [0, 32], sizes = [8, 32], strides = [1, 1]} : vector<8x128xf32> to vector<8x32xf32>
    %99 = arith.addf %97, %98 : vector<8x32xf32>
    %100 = arith.negf %99 : vector<8x32xf32>
    %101 = math.exp %100 : vector<8x32xf32>
    %cst_33 = arith.constant 1.000000e+00 : f32
    %102 = vector.broadcast %cst_33 : f32 to vector<8x32xf32>
    %103 = arith.addf %102, %101 : vector<8x32xf32>
    %104 = arith.divf %102, %103 : vector<8x32xf32>
    %105 = vector.extract_strided_slice %87 {offsets = [0, 64], sizes = [8, 32], strides = [1, 1]} : vector<8x128xf32> to vector<8x32xf32>
    %106 = vector.extract_strided_slice %88 {offsets = [0, 64], sizes = [8, 32], strides = [1, 1]} : vector<8x128xf32> to vector<8x32xf32>
    %107 = vector.broadcast %13 : vector<1x32xf32> to vector<8x32xf32>
    %108 = arith.addf %106, %107 : vector<8x32xf32>
    %109 = arith.mulf %96, %108 : vector<8x32xf32>
    %110 = arith.addf %105, %109 : vector<8x32xf32>
    %111 = math.tanh %110 : vector<8x32xf32>
    %112 = vector.extract_strided_slice %9 {offsets = [16, 0], sizes = [8, 32], strides = [1, 1]} : vector<24x32xf32> to vector<8x32xf32>
    %cst_34 = arith.constant 1.000000e+00 : f32
    %113 = vector.broadcast %cst_34 : f32 to vector<8x32xf32>
    %114 = arith.subf %113, %104 : vector<8x32xf32>
    %115 = arith.mulf %114, %111 : vector<8x32xf32>
    %116 = arith.mulf %104, %112 : vector<8x32xf32>
    %117 = arith.addf %115, %116 : vector<8x32xf32>
    %c16 = arith.constant 16 : index
    %c0_35 = arith.constant 0 : index
    %118 = vector.load %arg10[%c16, %c0_35] : memref<24x32xf32, #tpu.memory_space<vmem>>, vector<8x32xf32>
    tpu.vector_store %arg10[%c16, %c0_35], %117 {strides = array<i32>} : memref<24x32xf32, #tpu.memory_space<vmem>>, vector<8x32xf32>,
    %c0_36 = arith.constant 0 : index
    %c0_37 = arith.constant 0 : index
    %119 = vector.load %arg7[%c0_36, %c0_37] : memref<32x128xf32, #tpu.memory_space<vmem>>, vector<32x128xf32>
    %cst_38 = arith.constant dense<0.000000e+00> : vector<8x128xf32>
    %120 = tpu.matmul %117, %119, %cst_38 {dimension_numbers = #tpu.dot_dimension_numbers<[1], [0], [0], [1], [0, 0, 1, 1], [], []>} : vector<8x32xf32>, vector<32x128xf32>, vector<8x128xf32> -> vector<8x128xf32>
    %c0_39 = arith.constant 0 : index
    %c0_40 = arith.constant 0 : index
    %121 = vector.load %arg8[%c0_39, %c0_40] : memref<1x128xf32, #tpu.memory_space<vmem>>, vector<1x128xf32>
    %122 = vector.broadcast %121 : vector<1x128xf32> to vector<8x128xf32>
    %123 = arith.addf %120, %122 : vector<8x128xf32>
    %c0_41 = arith.constant 0 : index
    %c0_42 = arith.constant 0 : index
    %124 = vector.load %arg9[%c0_41, %c0_42] : memref<8x128xf32, #tpu.memory_space<vmem>>, vector<8x128xf32>
    tpu.vector_store %arg9[%c0_41, %c0_42], %123 {strides = array<i32>} : memref<8x128xf32, #tpu.memory_space<vmem>>, vector<8x128xf32>,
    return
  }
}

</mosaic_0001>

<bundles_post_ra>
// kernel: tpu_custom_call.1
= control target key start
LH: loop header
LB: loop body
LE: loop exit
PB: predicated region body
PF: predicated region fallthrough
CT: control target
= control target key end

     0   :  { %16 = vsyncpa [#allocation3], 0  ;;  %v515_v3 = vmov 0   ;;  %s734_s0 = inlined_call_operand.vmem [shape: s32[8,1], index: 0, kind: input, shape index: {}]   ;;  %s735_s1 = inlined_call_operand.vmem [shape: f32[128,32], index: 1, kind: input, shape index: {}]   ;;  %s736_s2 = inlined_call_operand.vmem [shape: f32[24,32], index: 2, kind: input, shape index: {}]   ;;  %s737_s3 = inlined_call_operand.vmem [shape: f32[32,128], index: 3, kind: input, shape index: {}]   ;;  %s738_s4 = inlined_call_operand.vmem [shape: f32[32,128], index: 4, kind: input, shape index: {}]   ;;  %s739_s5 = inlined_call_operand.vmem [shape: f32[1,128], index: 5, kind: input, shape index: {}]   ;;  %s740_s6 = inlined_call_operand.vmem [shape: f32[1,32], index: 6, kind: input, shape index: {}]   ;;  %s741_s7 = inlined_call_operand.vmem [shape: f32[32,128], index: 7, kind: input, shape index: {}]   ;;  %s742_s8 = inlined_call_operand.vmem [shape: f32[1,128], index: 8, kind: input, shape index: {}]   ;;  %s743_s9 = inlined_call_operand.hbm [shape: f32[8,128], index: 9, kind: output, shape index: {0}]   ;;  %s744_s10 = inlined_call_operand.hbm [shape: f32[24,32], index: 10, kind: output, shape index: {1}]  }
   0x1   :  { %v36_v0 = vld [vmem:[%s734_s0] sm:$0xff]  ;;  %v59_v1 = vld [vmem:[%s735_s1 + $0x78] sm:$0xff]  ;;  %v58_v2 = vld [vmem:[%s735_s1 + $0x70] sm:$0xff]  ;;  %441 = vset.pattern.permute.xlu0 %v515_v3 }
   0x2   :  { %60 = vmatpush.msra.mxu0 %v59_v1  ;;  %40 = vperm.xlu0 %441, %v36_v0   ;;  %v57_v4 = vld [vmem:[%s735_s1 + $0x68] sm:$0xff]  ;;  %v56_v5 = vld [vmem:[%s735_s1 + $0x60] sm:$0xff]  ;;  %v55_v6 = vld [vmem:[%s735_s1 + $0x58] sm:$0xff] }
   0x4   :  { %61 = vmatpush.msra.mxu0 %v58_v2 }
   0x6   :  { %62 = vmatpush.msra.mxu0 %v57_v4 }
   0x7   :  { %17 = vsyncpa [#allocation5], 0  ;;  %v54_v7 = vld [vmem:[%s735_s1 + $0x50] sm:$0xff]  ;;  %v53_v8 = vld [vmem:[%s735_s1 + $0x48] sm:$0xff]  ;;  %s516_s18 = smov 64   ;;  %vm87_vm0 = vcmask 261120   ;;  %v37_v29 = vlaneseq }
   0x8   :  { %63 = vmatpush.msra.mxu0 %v56_v5  ;;  %v52_v9 = vld [vmem:[%s735_s1 + $0x40] sm:$0xff]  ;;  %v51_v10 = vld [vmem:[%s735_s1 + $0x38] sm:$0xff]  ;;  %v50_v11 = vld [vmem:[%s735_s1 + $0x30] sm:$0xff]  ;;  %v517_v32 = vmov 1.0   ;;  %s520_s14 = smov [#allocation4]   ;;  %s522_s19 = smov 8  }
   0x9   :  { %v49_v12 = vld [vmem:[%s735_s1 + $0x28] sm:$0xff]  ;;  %v48_v13 = vld [vmem:[%s735_s1 + $0x20] sm:$0xff]  ;;  %v47_v14 = vld [vmem:[%s735_s1 + $0x18] sm:$0xff]  ;;  %v38_v30 = vand.u32 127, %v37_v29  ;;  %s402_s15 = sshll.u32 %s520_s14, 4  ;;  %s523_s21 = smov [#allocation2]   ;;  %s403_s15 = int_to_ptr.vmem [resolvable:$true] %s402_s15 }
   0xa   :  { %64 = vmatpush.msra.mxu0 %v55_v6  ;;  %v46_v15 = vld [vmem:[%s735_s1 + $0x10] sm:$0xff]  ;;  %v45_v16 = vld [vmem:[%s735_s1 + $0x8] sm:$0xff]  ;;  %v44_v17 = vld [vmem:[%s735_s1] sm:$0xff]  ;;  %s394_s23 = sshll.u32 %s743_s9, 4  ;;  %s395_s23 = int_to_ptr.hbm [resolvable:$true] %s394_s23 }
   0xb   :  { %v86_v18 = vld [vmem:[%s738_s4 + $0x18] sm:$0xff]  ;;  %v85_v19 = vld [vmem:[%s738_s4 + $0x10] sm:$0xff]  ;;  %v84_v20 = vld [vmem:[%s738_s4 + $0x8] sm:$0xff] }
   0xc   :  { %65 = vmatpush.msra.mxu0 %v54_v7  ;;  %109 = vmatpush.msra.mxu1 %v86_v18  ;;  %v442_v21 = vld [vmem:[%s740_s6] ss:$0 sm:$0xff]  ;;  %v128_v22 = vld [vmem:[%s737_s3 + $0x18] sm:$0xff]  ;;  %v127_v23 = vld [vmem:[%s737_s3 + $0x10] sm:$0xff] }
   0xd   :  { %147 = vmatpush.msra.mxu2 %v128_v22  ;;  %v83_v24 = vld [vmem:[%s738_s4] sm:$0xff]  ;;  %177 = vrot.lane.b32.xlu0 %v442_v21, %s516_s18  ;;  %v126_v25 = vld [vmem:[%s737_s3 + $0x8] sm:$0xff]  ;;  %v669_v28 = vld [vmem:[%s736_s2 + $0x10] sm:$0xff]  ;;  %s392_s4 = sshll.u32 %s523_s21, 4  ;;  %s393_s4 = int_to_ptr.vmem [resolvable:$true] %s392_s4 }
   0xe   :  { %66 = vmatpush.msra.mxu0 %v53_v8  ;;  %110 = vmatpush.msra.mxu1 %v85_v19  ;;  %v658_v26 = vld [vmem:[%s736_s2] sm:$0xff]  ;;  %v81_v27 = vld [vmem:[%s736_s2 + $0x8] sm:$0xff] }
   0xf   :  { %226 = vmatpush.msra.mxu3 %v128_v22  ;;  %148 = vmatpush.msra.mxu2 %v127_v23  ;;  %v125_v33 = vld [vmem:[%s737_s3] sm:$0xff]  ;;  %s518_s3 = smov 32  }
  0x10   :  { %67 = vmatpush.msra.mxu0 %v52_v9  ;;  %111 = vmatpush.msra.mxu1 %v84_v20  ;;  %v684_v38 = vld [vmem:[%s739_s5] ss:$0 sm:$0xff]  ;;  %s519_s5 = smov 96  }
  0x11   :  { %227 = vmatpush.msra.mxu3 %v127_v23  ;;  %149 = vmatpush.msra.mxu2 %v126_v25 }
  0x12   :  { %68 = vmatpush.msra.mxu0 %v51_v10  ;;  %112 = vmatpush.msra.mxu1 %v83_v24 }
  0x13   :  { %422 = vmatmul.msk.f32.vlgmr.msra.gmra.mxu1 %vm87_vm0, %v658_v26  ;;  %228 = vmatpush.msra.mxu3 %v126_v25 }
  0x14   :  { %69 = vmatpush.msra.mxu0 %v50_v11  ;;  %150 = vmatpush.msra.mxu2 %v125_v33 }
  0x15   :  { %229 = vmatpush.msra.mxu3 %v125_v33 }
  0x16   :  { %70 = vmatpush.msra.mxu0 %v49_v12  ;;  %300 = vmatpush.msrb.mxu2 %v128_v22 }
  0x18   :  { %71 = vmatpush.msra.mxu0 %v48_v13  ;;  %301 = vmatpush.msrb.mxu2 %v127_v23 }
  0x1a   :  { %72 = vmatpush.msra.mxu0 %v47_v14  ;;  %302 = vmatpush.msrb.mxu2 %v126_v25 }
  0x1b   :  { %423 = vmatmul.msk.f32.gmra.mxu1 %vm87_vm0, %v81_v27 }
  0x1c   :  { %73 = vmatpush.msra.mxu0 %v46_v15  ;;  %303 = vmatpush.msrb.mxu2 %v125_v33 }
  0x1e   :  { %74 = vmatpush.msra.mxu0 %v45_v16 }
  0x20   :  { %75 = vmatpush.msra.mxu0 %v44_v17 }
  0x23   :  { %424 = vmatmul.msk.f32.gmra.mxu1 %vm87_vm0, %v669_v28 }
  0x74   :  { %v41_v31 = vpop.permute.xlu0 %40 }
  0x75   :  { %vm42_vm1 = vcmp.eq.s32.totalorder %v38_v30, %v41_v31 }
  0x76   :  { %421 = vmatmul.msk.f32.vlgmr.msra.gmra.mxu0 %vm42_vm1, %v517_v32 }
  0x7f   :  { %v676_v34 = vpop.permute.xlu0 %177 }
  0x90   :  { %v114_v35 = vpop.f32.mrf.mxu1 }
  0x91   :  { %v180_v36 = vadd.f32 %v676_v34, %v114_v35 }
  0x93   :  { %182 = vrot.lane.b32.xlu1 %v180_v36, %s516_s18 }
  0x98   :  { %v117_v57 = vpop.f32.mrf.mxu1 }
  0x99   :  { %v254_v58 = vadd.f32 %v676_v34, %v117_v57 }
  0xf3   :  { %v77_v37 = vpop.f32.mrf.mxu0 }
  0xf4   :  { %425 = vmatmul.msk.f32.vlgmr.msra.gmra.mxu2 %vm87_vm0, %v77_v37 }
 0x105   :  { %v183_v53 = vpop.permute.xlu1 %182 }
 0x177   :  { %v152_v39 = vpop.f32.mrf.mxu2 }
 0x178   :  { %v153_v40 = vadd.f32 %v684_v38, %v152_v39 }
 0x17a   :  { %v155_v41 = vadd.f32 %v153_v40, %v114_v35 }
 0x17c   :  { %v426_v42 = vmul.f32 -1.442695, %v155_v41 }
 0x17e   :  { %445 = vpow2.f32 %v426_v42 }
 0x184   :  { %v446_v43 = vpop.eup %445 }
 0x185   :  { %v159_v44 = vadd.f32 1.0, %v446_v43 }
 0x187   :  { %447 = vrcp.f32 %v159_v44  ;;  %v171_v48 = vand.u32 2147483648, %v159_v44  ;;  %v169_v50 = vand.u32 2147483647, %v159_v44  ;;  %vm165_vm3 = vweird.f32 %v159_v44 }
 0x189   :  { %v172_v52 = vor.u32 1.1754944e-38, %v171_v48  ;;  %vm170_vm5 = vcmp.eq.f32.partialorder %v169_v50, 8.507059e+37 }
 0x18d   :  { %v448_v45 = vpop.eup %447 }
 0x18e   :  { %v161_v46 = vmul.f32 %v448_v45, %v159_v44  ;;  %vm166_vm2 = vweird.f32 %v448_v45 }
 0x18f   :  { %vm167_vm4 = vmor %vm165_vm3, %vm166_vm2 }
 0x190   :  { %v162_v47 = vsub.f32 1.0, %v161_v46 }
 0x192   :  { %v163_v49 = vmul.f32 %v448_v45, %v162_v47 }
 0x194   :  { %v164_v51 = vadd.f32 %v448_v45, %v163_v49 }
 0x196   :  { %v168_v54 = vsel %vm167_vm4, %v448_v45, %v164_v51 }
 0x197   :  { %v173_v55 = vsel %vm170_vm5, %v172_v52, %v168_v54 }
 0x198   :  { %v185_v56 = vmul.f32 %v183_v53, %v173_v55  ;;  %v192_v63 = vsub.f32 1.0, %v173_v55 }
 0x19a   :  { %187 = vrot.lane.b32.xlu1 %v185_v56, %s516_s18  ;;  %v359_v56 = vld [vmem:[%s741_s7 + $0x18] sm:$0xff] }
 0x19b   :  { %378 = vmatpush.msrb.mxu3 %v359_v56 }
 0x1a2   :  { %256 = vrot.lane.b32.xlu1 %v254_v58, %s516_s18  ;;  %v357_v58 = vld [vmem:[%s741_s7 + $0x8] sm:$0xff] }
 0x1aa   :  { %272 = vrot.lane.b32.xlu1 %v81_v27, %s518_s3 }
 0x20c   :  { %v188_v59 = vpop.permute.xlu1 %187 }
 0x20d   :  { %v190_v60 = vadd.f32 %v188_v59, %v153_v40  ;;  %v356_v59 = vld [vmem:[%s741_s7] sm:$0xff] }
 0x20f   :  { %449 = vtanh.f32 %v190_v60 }
 0x214   :  { %v257_v20 = vpop.permute.xlu1 %256 }
 0x215   :  { %v450_v61 = vpop.eup %449 }
 0x216   :  { %194 = vrot.lane.b32.xlu2 %v450_v61, %s519_s5 }
 0x21c   :  { %v273_v29 = vpop.permute.xlu1 %272 }
 0x21e   :  { %198 = vrot.lane.b32.xlu2 %v658_v26, %s518_s3  ;;  %v120_v26 = vpop.f32.mrf.mxu1 }
 0x21f   :  { %v328_v27 = vadd.f32 %v676_v34, %v120_v26 }
 0x270   :  { %v195_v62 = vpop.permute.xlu2 %194 }
 0x271   :  { %v197_v1 = vmul.f32 %v195_v62, %v192_v63 }
 0x278   :  { %v199_v0 = vpop.permute.xlu2 %198 }
 0x279   :  { %v201_v2 = vmul.f32 %v199_v0, %v173_v55 }
 0x27b   :  { %v202_v3 = vadd.f32 %v201_v2, %v197_v1 }
 0x27d   :  { %204 = vrot.lane.b32.xlu0 %v202_v3, %s519_s5  ;;  %v444_v3 = vld [vmem:[%s742_s8] ss:$0 sm:$0xff] }
 0x2ef   :  { %v205_v4 = vpop.permute.xlu0 %204 }
 0x2f0   :  { %207 = vst.msk [vmem:[#allocation4] sm:$0xff] %vm87_vm0, %v205_v4  ;;  %427 = vmatmul.msk.f32.vlgmr.msra.gmra.mxu3 %vm87_vm0, %v205_v4 }
 0x373   :  { %v231_v5 = vpop.f32.mrf.mxu3 }
 0x374   :  { %v232_v6 = vadd.f32 %v684_v38, %v231_v5 }
 0x376   :  { %v234_v7 = vadd.f32 %v232_v6, %v117_v57  ;;  %v358_v57 = vld [vmem:[%s741_s7 + $0x10] sm:$0xff]  ;;  %s404_s7 = sshll.u32 %s744_s10, 4  ;;  %s405_s7 = int_to_ptr.hbm [resolvable:$true] %s404_s7 }
 0x377   :  { %379 = vmatpush.msrb.mxu3 %v358_v57 }
 0x378   :  { %v428_v8 = vmul.f32 -1.442695, %v234_v7 }
 0x379   :  { %380 = vmatpush.msrb.mxu3 %v357_v58 }
 0x37a   :  { %451 = vpow2.f32 %v428_v8 }
 0x37b   :  { %381 = vmatpush.msrb.mxu3 %v356_v59 }
 0x380   :  { %v452_v9 = vpop.eup %451 }
 0x381   :  { %v238_v10 = vadd.f32 1.0, %v452_v9 }
 0x383   :  { %453 = vrcp.f32 %v238_v10  ;;  %v250_v14 = vand.u32 2147483648, %v238_v10  ;;  %v248_v16 = vand.u32 2147483647, %v238_v10  ;;  %vm244_vm7 = vweird.f32 %v238_v10 }
 0x385   :  { %v251_v18 = vor.u32 1.1754944e-38, %v250_v14  ;;  %vm249_vm9 = vcmp.eq.f32.partialorder %v248_v16, 8.507059e+37 }
 0x389   :  { %v454_v11 = vpop.eup %453 }
 0x38a   :  { %v240_v12 = vmul.f32 %v454_v11, %v238_v10  ;;  %vm245_vm6 = vweird.f32 %v454_v11 }
 0x38b   :  { %vm246_vm8 = vmor %vm244_vm7, %vm245_vm6 }
 0x38c   :  { %v241_v13 = vsub.f32 1.0, %v240_v12 }
 0x38e   :  { %v242_v15 = vmul.f32 %v454_v11, %v241_v13 }
 0x390   :  { %v243_v17 = vadd.f32 %v454_v11, %v242_v15 }
 0x392   :  { %v247_v19 = vsel %vm246_vm8, %v454_v11, %v243_v17 }
 0x393   :  { %v252_v21 = vsel %vm249_vm9, %v251_v18, %v247_v19 }
 0x394   :  { %v259_v22 = vmul.f32 %v257_v20, %v252_v21  ;;  %v266_v30 = vsub.f32 1.0, %v252_v21  ;;  %v275_v32 = vmul.f32 %v273_v29, %v252_v21 }
 0x396   :  { %261 = vrot.lane.b32.xlu2 %v259_v22, %s516_s18 }
 0x3f0   :  { %v262_v23 = vpop.permute.xlu2 %261 }
 0x3f1   :  { %v264_v24 = vadd.f32 %v262_v23, %v232_v6 }
 0x3f3   :  { %455 = vtanh.f32 %v264_v24 }
 0x3f9   :  { %v456_v25 = vpop.eup %455 }
 0x3fa   :  { %268 = vrot.lane.b32.xlu0 %v456_v25, %s519_s5 }
 0x402   :  { %330 = vrot.lane.b32.xlu0 %v328_v27, %s516_s18 }
 0x40a   :  { %346 = vrot.lane.b32.xlu0 %v669_v28, %s518_s3 }
 0x46c   :  { %v269_v31 = vpop.permute.xlu0 %268 }
 0x46d   :  { %v271_v33 = vmul.f32 %v269_v31, %v266_v30 }
 0x46f   :  { %v276_v35 = vadd.f32 %v275_v32, %v271_v33 }
 0x471   :  { %278 = vrot.lane.b32.xlu2 %v276_v35, %s519_s5 }
 0x4cb   :  { %v279_v36 = vpop.permute.xlu2 %278 }
 0x4cc   :  { %281 = vst.msk [vmem:[#allocation4 + $0x8] sm:$0xff] %vm87_vm0, %v279_v36  ;;  %429 = vmatmul.msk.f32.vlgmr.msrb.gmra.mxu2 %vm87_vm0, %v279_v36 }
 0x54f   :  { %v305_v37 = vpop.f32.mrf.mxu2 }
 0x550   :  { %v306_v34 = vadd.f32 %v684_v38, %v305_v37  ;;  %v331_v38 = vpop.permute.xlu0 %330 }
 0x552   :  { %v308_v39 = vadd.f32 %v306_v34, %v120_v26 }
 0x554   :  { %v430_v40 = vmul.f32 -1.442695, %v308_v39 }
 0x556   :  { %457 = vpow2.f32 %v430_v40 }
 0x558   :  { %v347_v60 = vpop.permute.xlu0 %346 }
 0x55c   :  { %v458_v28 = vpop.eup %457 }
 0x55d   :  { %v312_v41 = vadd.f32 1.0, %v458_v28 }
 0x55f   :  { %459 = vrcp.f32 %v312_v41  ;;  %v324_v45 = vand.u32 2147483648, %v312_v41  ;;  %v322_v47 = vand.u32 2147483647, %v312_v41  ;;  %vm318_vm11 = vweird.f32 %v312_v41 }
 0x561   :  { %v325_v49 = vor.u32 1.1754944e-38, %v324_v45  ;;  %vm323_vm13 = vcmp.eq.f32.partialorder %v322_v47, 8.507059e+37 }
 0x565   :  { %v460_v42 = vpop.eup %459 }
 0x566   :  { %v314_v43 = vmul.f32 %v460_v42, %v312_v41  ;;  %vm319_vm10 = vweird.f32 %v460_v42 }
 0x567   :  { %vm320_vm12 = vmor %vm318_vm11, %vm319_vm10 }
 0x568   :  { %v315_v44 = vsub.f32 1.0, %v314_v43 }
 0x56a   :  { %v316_v46 = vmul.f32 %v460_v42, %v315_v44 }
 0x56c   :  { %v317_v48 = vadd.f32 %v460_v42, %v316_v46 }
 0x56e   :  { %v321_v50 = vsel %vm320_vm12, %v460_v42, %v317_v48 }
 0x56f   :  { %v326_v51 = vsel %vm323_vm13, %v325_v49, %v321_v50 }
 0x570   :  { %v333_v52 = vmul.f32 %v331_v38, %v326_v51  ;;  %v340_v61 = vsub.f32 1.0, %v326_v51  ;;  %v349_v63 = vmul.f32 %v347_v60, %v326_v51 }
 0x572   :  { %335 = vrot.lane.b32.xlu1 %v333_v52, %s516_s18  ;;  %s521_s18 = smov 128  }
 0x5e4   :  { %v336_v53 = vpop.permute.xlu1 %335 }
 0x5e5   :  { %v338_v54 = vadd.f32 %v336_v53, %v306_v34 }
 0x5e7   :  { %461 = vtanh.f32 %v338_v54 }
 0x5ed   :  { %v462_v55 = vpop.eup %461 }
 0x5ee   :  { %342 = vrot.lane.b32.xlu2 %v462_v55, %s519_s5 }
 0x648   :  { %v343_v62 = vpop.permute.xlu2 %342 }
 0x649   :  { %v345_v0 = vmul.f32 %v343_v62, %v340_v61 }
 0x64b   :  { %v350_v1 = vadd.f32 %v349_v63, %v345_v0 }
 0x64d   :  { %352 = vrot.lane.b32.xlu1 %v350_v1, %s519_s5 }
 0x6bf   :  { %v353_v2 = vpop.permute.xlu1 %352 }
 0x6c0   :  { %355 = vst.msk [vmem:[#allocation4 + $0x10] sm:$0xff] %vm87_vm0, %v353_v2  ;;  %431 = vmatmul.msk.f32.vlgmr.msrb.gmra.mxu3 %vm87_vm0, %v353_v2 }
 0x6c1   :  { %410 = dma.vmem_to_hbm [thread:$0]  %s403_s15, 384, %s405_s7, [#allocation5], %s521_s18, %s521_s18, %s522_s19  }
 0x743   :  { %v383_v4 = vpop.f32.mrf.mxu3 }
 0x744   :  { %v384_v5 = vadd.f32 %v444_v3, %v383_v4 }
 0x746   :  { %386 = vst [vmem:[#allocation2] sm:$0xff] %v384_v5 }
 0x747   :  { %397 = dma.vmem_to_hbm [thread:$0]  %s393_s4, 128, %s395_s23, [#allocation3]  }
 0x748   :  { %511 = dma.done.wait [#allocation3], 128  }
 0x749   :  { %512 = vsyncadd [#allocation3], 4294967168 }
 0x74a   :  { %513 = dma.done.wait [#allocation5], 384  }
 0x74b   :  { %514 = vsyncadd [#allocation5], 4294966912 }
 0x74c   :  { %419 = vsyncpa [#allocation3], 1 }
 0x74d   :  { %420 = vsyncpa [#allocation5], 1 }

</bundles_post_ra>
